<compile_context>
chip_gen: v7x
topology: tpu7x:2x2x1
jax: 0.10.0
libtpu: 0.0.40
codegen_flags: <defaults>
</compile_context>

<pallas_src>
import functools

import jax
import jax.numpy as jnp
from jax import lax
from jax.experimental import pallas as pl
from jax.experimental.pallas import tpu as pltpu


_WIDE_CHANNEL_THRESHOLD = 256       # c_in_p at/above which the im2col slab is skipped
_VMEM_TILE_BUDGET = 40 * 2 ** 20    # per-step working-set budget (fits v7x 64 MiB)
_VMEM_LIMIT_CAP = 48 * 2 ** 20      # scoped-VMEM request cap (<= v7x physical)


def _round_up(x, m):
    return (x + m - 1) // m * m


def _cdiv(a, b):
    return -(-a // b)


def _kernel_slab(x_lo_ref, x_hi_ref, w_ref, b_ref, o_ref, slab_ref,
                 *, kernel_size, dilation, tile_l):
    """Narrow-channel path: im2col slab -> one fused MXU dot.

    x_lo_ref : (1, C_in_p, TILE_L)    L-tile j of the padded input
    x_hi_ref : (1, C_in_p, HALO_BLK)  first HALO_BLK columns of tile j+1 (halo)
    w_ref    : (C_out_p, K*C_in_p)    repacked weights (tap-major, channel-minor)
    b_ref    : (C_out_p, 1)           f32 bias
    o_ref    : (1, C_out_p, TILE_L)
    slab_ref : (K*C_in_p, TILE_L)     VMEM im2col scratch
    """
    c_in_p = x_lo_ref.shape[1]
    for kk in range(kernel_size):               # K is tiny & static
        off = kk * dilation
        row0 = kk * c_in_p
        if off == 0:
            slab_ref[row0:row0 + c_in_p, :] = x_lo_ref[0]
        else:
            if off < tile_l:
                slab_ref[row0:row0 + c_in_p, 0:tile_l - off] = \
                    x_lo_ref[0, :, off:tile_l]
            slab_ref[row0:row0 + c_in_p, tile_l - off:tile_l] = \
                x_hi_ref[0, :, 0:off]
    acc = jnp.dot(w_ref[...], slab_ref[...], preferred_element_type=jnp.float32)
    acc = acc + b_ref[...]                      # broadcast (C_out_p, 1)
    o_ref[0] = jnp.maximum(acc, 0.0).astype(o_ref.dtype)


def _kernel_taps(x_lo_ref, x_hi_ref, w_ref, b_ref, o_ref, acc_ref,
                 *, kernel_size, dilation, tile_l):
    """Wide-channel path: K accumulating dots (depth C_in_p), no im2col slab.

    w_ref   : (K, C_out_p, C_in_p)
    acc_ref : (C_out_p, TILE_L) f32 scratch accumulator
    """
    for kk in range(kernel_size):
        off = kk * dilation
        wk = w_ref[kk]
        if kk == 0:
            acc_ref[...] = jnp.dot(wk, x_lo_ref[0],
                                   preferred_element_type=jnp.float32)
        else:
            if off < tile_l:
                acc_ref[:, 0:tile_l - off] += jnp.dot(
                    wk, x_lo_ref[0, :, off:tile_l],
                    preferred_element_type=jnp.float32)
            acc_ref[:, tile_l - off:tile_l] += jnp.dot(
                wk, x_hi_ref[0, :, 0:off],
                preferred_element_type=jnp.float32)
    o_ref[0] = jnp.maximum(acc_ref[...] + b_ref[...], 0.0).astype(o_ref.dtype)


def _pick_tile_l(l_full, n_batch, c_in_p, c_out_p, k, halo_blk,
                 bytes_in, bytes_out, use_slab, tile_l_hint):
    """Pick a lane tile that amortizes grid overhead yet fits the VMEM budget."""
    per_col = 2 * c_in_p * bytes_in + 2 * c_out_p * bytes_out
    per_col += (k * c_in_p * bytes_in) if use_slab else (4 * c_out_p)
    fixed = (2 * c_in_p * halo_blk * bytes_in       # halo double buffer
             + 2 * k * c_out_p * c_in_p * bytes_in  # weight double buffer
             + 8 * c_out_p)                         # bias
    cap = max(halo_blk, (_VMEM_TILE_BUDGET - fixed) // max(per_col, 1))
    if tile_l_hint is not None:
        target = tile_l_hint
    elif c_in_p <= 64:
        target = 4096        # narrow channels: amortize ~0.35us per grid step
    elif c_in_p <= 256:
        target = 1024
    else:
        target = 512
    tile_l = min(target, cap, _round_up(l_full, halo_blk))
    if n_batch == 1 and l_full > halo_blk:
        # Batch==1: split L so both v7x TensorCores get work.
        tile_l = min(tile_l, _round_up(_cdiv(l_full, 2), halo_blk))
    tile_l = max(halo_blk, tile_l // halo_blk * halo_blk)
    est_bytes = fixed + per_col * tile_l
    return tile_l, est_bytes


@functools.partial(jax.jit,
                   static_argnames=("stride", "dilation", "padding",
                                    "compute_dtype", "out_dtype", "tile_l"))
def temporal_block(x, w, b, *, stride, dilation, padding,
                   compute_dtype=None, out_dtype=None, tile_l=None):
    """Conv1d(stride, dilation, padding) + ReLU.  x: (N, C_in, L) (NCL)."""
    n, c_in, l = x.shape
    c_out, c_in_w, k = w.shape
    assert c_in == c_in_w

    l_pad = l + 2 * padding
    halo = dilation * (k - 1)
    l_full = l_pad - halo                     # stride-1 output length
    assert l_full >= 1, "input too short for this kernel/dilation/padding"
    l_out = (l_full - 1) // stride + 1        # == PyTorch Conv1d L_out

    cdt = jnp.dtype(compute_dtype) if compute_dtype is not None else x.dtype
    odt = jnp.dtype(out_dtype) if out_dtype is not None else x.dtype

    # Channel padding to the sublane multiple (8 for f32, 16 for bf16).
    sub = 16 if cdt == jnp.dtype(jnp.bfloat16) else 8
    c_in_p = _round_up(c_in, sub)
    c_out_p = _round_up(c_out, sub)

    # Halo block: smallest 128-multiple covering dilation*(K-1).
    halo_blk = _round_up(max(halo, 1), 128)

    use_slab = c_in_p < _WIDE_CHANNEL_THRESHOLD
    tile_l_sel, est_bytes = _pick_tile_l(
        l_full, n, c_in_p, c_out_p, k, halo_blk,
        cdt.itemsize, odt.itemsize, use_slab, tile_l)
    tile_l = tile_l_sel
    assert tile_l % halo_blk == 0 and halo <= tile_l
    n_tiles = _cdiv(l_full, tile_l)
    blocks_per_tile = tile_l // halo_blk
    l_total = n_tiles * tile_l + halo_blk     # only one extra halo block

    # Pad channels; length = [padding | x | zeros up to l_total].
    # (cast fuses with the pad under jit; it's a no-op when cdt == x.dtype)
    x_p = jnp.pad(x.astype(cdt),
                  ((0, 0), (0, c_in_p - c_in),
                   (padding, l_total - l - padding)))

    w_p = jnp.pad(w, ((0, c_out_p - c_out), (0, c_in_p - c_in), (0, 0)))
    b2 = jnp.pad(b, (0, c_out_p - c_out)).reshape(c_out_p, 1).astype(jnp.float32)

    if use_slab:
        # (C_out, C_in, K) -> (C_out_p, K*C_in_p), row order (tap, channel).
        w2 = jnp.transpose(w_p, (0, 2, 1)).reshape(c_out_p, k * c_in_p).astype(cdt)
        w_spec = pl.BlockSpec((c_out_p, k * c_in_p), lambda i, j: (0, 0))
        kernel = functools.partial(_kernel_slab, kernel_size=k,
                                   dilation=dilation, tile_l=tile_l)
        scratch = [pltpu.VMEM((k * c_in_p, tile_l), cdt)]
    else:
        # Wide channels: (K, C_out_p, C_in_p) per-tap weights, no slab.
        w2 = jnp.transpose(w_p, (2, 0, 1)).astype(cdt)
        w_spec = pl.BlockSpec((k, c_out_p, c_in_p), lambda i, j: (0, 0, 0))
        kernel = functools.partial(_kernel_taps, kernel_size=k,
                                   dilation=dilation, tile_l=tile_l)
        scratch = [pltpu.VMEM((c_out_p, tile_l), jnp.float32)]

    vmem_limit = int(min(_VMEM_LIMIT_CAP,
                         max(32 * 2 ** 20, est_bytes + 4 * 2 ** 20)))

    out_full = pl.pallas_call(
        kernel,
        out_shape=jax.ShapeDtypeStruct((n, c_out_p, n_tiles * tile_l), odt),
        grid_spec=pltpu.PrefetchScalarGridSpec(
            num_scalar_prefetch=0,
            grid=(n, n_tiles),
            in_specs=[
                pl.BlockSpec((1, c_in_p, tile_l), lambda i, j: (i, 0, j)),
                # Halo: only halo_blk (>= dilation*(K-1)) columns of tile j+1.
                pl.BlockSpec((1, c_in_p, halo_blk),
                             lambda i, j: (i, 0, (j + 1) * blocks_per_tile)),
                w_spec,
                pl.BlockSpec(b2.shape, lambda i, j: (0, 0)),
            ],
            out_specs=pl.BlockSpec((1, c_out_p, tile_l), lambda i, j: (i, 0, j)),
            scratch_shapes=scratch,
        ),
        compiler_params=pltpu.CompilerParams(
            dimension_semantics=("parallel", "parallel"),
            vmem_limit_bytes=vmem_limit),
    )(x_p, x_p, w2, b2)

    # Strip channel / length padding; decimate for stride > 1.
    # (Columns beyond l_full hold ReLU(bias) garbage and are dropped here.)
    out = out_full[:, :c_out, :l_full]
    if stride > 1:
        # TODO(synk): stride>1 is handled by computing the stride-1 result and
        # decimating (extra MXU work + output bytes); true in-kernel striding
        # needs strided lane loads, avoided here for lowering robustness.
        out = out[:, :, ::stride]
    return out[:, :, :l_out]


def _reference(x, w, b, *, stride, dilation, padding):
    y = lax.conv_general_dilated(
        x, w,
        window_strides=(stride,),
        padding=[(padding, padding)],
        rhs_dilation=(dilation,),
        dimension_numbers=("NCH", "OIH", "NCH"),
    )
    y = y + b.reshape(1, -1, 1)
    return jnp.maximum(y, 0.0)


def _make_params(key, in_channels, out_channels, kernel_size):
    kw, kb = jax.random.split(key)
    fan_in = in_channels * kernel_size
    bound = 1.0 / (fan_in ** 0.5)
    w = jax.random.uniform(kw, (out_channels, in_channels, kernel_size),
                           jnp.float32, -bound, bound)
    b = jax.random.uniform(kb, (out_channels,), jnp.float32, -bound, bound)
    return w, b


if __name__ == "__main__":
    key = jax.random.PRNGKey(0)
    k0, k1, k2, k3 = jax.random.split(key, 4)

    # Case 1: canonical TemporalBlock config (stride=1, symmetric padding).
    in_c, out_c, ks, st, dil = 4, 8, 3, 1, 2
    pad = (ks - 1) * dil // 2
    x1 = jax.random.normal(k0, (2, in_c, 16), jnp.float32)
    w1, b1 = _make_params(k1, in_c, out_c, ks)
    o1 = jax.block_until_ready(
        temporal_block(x1, w1, b1, stride=st, dilation=dil, padding=pad))
    r1 = _reference(x1, w1, b1, stride=st, dilation=dil, padding=pad)
    assert o1.shape == r1.shape, (o1.shape, r1.shape)
    assert jnp.allclose(o1, r1, atol=1e-5, rtol=1e-5), \
        float(jnp.max(jnp.abs(o1 - r1)))

    # Case 2: non-multiple-of-8 channels, stride=2, larger dilation.
    in_c, out_c, ks, st, dil, pad = 6, 10, 3, 2, 4, 4
    x2 = jax.random.normal(k2, (2, in_c, 40), jnp.float32)
    w2, b2 = _make_params(k3, in_c, out_c, ks)
    o2 = jax.block_until_ready(
        temporal_block(x2, w2, b2, stride=st, dilation=dil, padding=pad))
    r2 = _reference(x2, w2, b2, stride=st, dilation=dil, padding=pad)
    assert o2.shape == r2.shape, (o2.shape, r2.shape)
    assert jnp.allclose(o2, r2, atol=1e-5, rtol=1e-5), \
        float(jnp.max(jnp.abs(o2 - r2)))

    print("KERNEL_OK")
</pallas_src>

<mosaic_0001>
module attributes {stable_mosaic.version = 11 : i64} {
  func.func @_kernel_slab(%arg0: i32, %arg1: i32, %arg2: memref<1x8x128xf32, #tpu.memory_space<vmem>>, %arg3: memref<1x8x128xf32, #tpu.memory_space<vmem>>, %arg4: memref<8x24xf32, #tpu.memory_space<vmem>>, %arg5: memref<8x1xf32, #tpu.memory_space<vmem>>, %arg6: memref<1x8x128xf32, #tpu.memory_space<vmem>>, %arg7: memref<24x128xf32, #tpu.memory_space<vmem>>) attributes {dimension_semantics = [#tpu.dimension_semantics<parallel>, #tpu.dimension_semantics<parallel>], iteration_bounds = array<i64: 2, 1>, scalar_prefetch = 0 : i64, scratch_operands = 1 : i64, tpu.core_type = #tpu.core_type<tc>, window_params = [{transform_indices = @transform_0, window_bounds = array<i64: 1, 8, 128>}, {transform_indices = @transform_1, window_bounds = array<i64: 1, 8, 128>}, {pipeline_mode = #tpu.pipeline_mode<synchronous>, transform_indices = @transform_2, window_bounds = array<i64: 8, 24>}, {pipeline_mode = #tpu.pipeline_mode<synchronous>, transform_indices = @transform_3, window_bounds = array<i64: 8, 1>}, {transform_indices = @transform_4, window_bounds = array<i64: 1, 8, 128>}]} {
    %c0 = arith.constant 0 : index
    %c0_0 = arith.constant 0 : index
    %c0_1 = arith.constant 0 : index
    %0 = vector.load %arg2[%c0, %c0_0, %c0_1] : memref<1x8x128xf32, #tpu.memory_space<vmem>>, vector<1x8x128xf32>
    %1 = vector.shape_cast %0 : vector<1x8x128xf32> to vector<8x128xf32>
    %c0_2 = arith.constant 0 : index
    %c0_3 = arith.constant 0 : index
    %2 = vector.load %arg7[%c0_2, %c0_3] : memref<24x128xf32, #tpu.memory_space<vmem>>, vector<8x128xf32>
    tpu.vector_store %arg7[%c0_2, %c0_3], %1 {strides = array<i32>} : memref<24x128xf32, #tpu.memory_space<vmem>>, vector<8x128xf32>,
    %c0_4 = arith.constant 0 : index
    %c0_5 = arith.constant 0 : index
    %c2 = arith.constant 2 : index
    %3 = vector.load %arg2[%c0_4, %c0_5, %c2] : memref<1x8x128xf32, #tpu.memory_space<vmem>>, vector<1x8x126xf32>
    %4 = vector.shape_cast %3 : vector<1x8x126xf32> to vector<8x126xf32>
    %c8 = arith.constant 8 : index
    %c0_6 = arith.constant 0 : index
    %5 = vector.load %arg7[%c8, %c0_6] : memref<24x128xf32, #tpu.memory_space<vmem>>, vector<8x126xf32>
    tpu.vector_store %arg7[%c8, %c0_6], %4 {strides = array<i32>} : memref<24x128xf32, #tpu.memory_space<vmem>>, vector<8x126xf32>,
    %c0_7 = arith.constant 0 : index
    %c0_8 = arith.constant 0 : index
    %c0_9 = arith.constant 0 : index
    %6 = vector.load %arg3[%c0_7, %c0_8, %c0_9] : memref<1x8x128xf32, #tpu.memory_space<vmem>>, vector<1x8x2xf32>
    %7 = vector.shape_cast %6 : vector<1x8x2xf32> to vector<8x2xf32>
    %c8_10 = arith.constant 8 : index
    %c126 = arith.constant 126 : index
    %8 = vector.load %arg7[%c8_10, %c126] : memref<24x128xf32, #tpu.memory_space<vmem>>, vector<8x2xf32>
    tpu.vector_store %arg7[%c8_10, %c126], %7 {strides = array<i32>} : memref<24x128xf32, #tpu.memory_space<vmem>>, vector<8x2xf32>,
    %c0_11 = arith.constant 0 : index
    %c0_12 = arith.constant 0 : index
    %c4 = arith.constant 4 : index
    %9 = vector.load %arg2[%c0_11, %c0_12, %c4] : memref<1x8x128xf32, #tpu.memory_space<vmem>>, vector<1x8x124xf32>
    %10 = vector.shape_cast %9 : vector<1x8x124xf32> to vector<8x124xf32>
    %c16 = arith.constant 16 : index
    %c0_13 = arith.constant 0 : index
    %11 = vector.load %arg7[%c16, %c0_13] : memref<24x128xf32, #tpu.memory_space<vmem>>, vector<8x124xf32>
    tpu.vector_store %arg7[%c16, %c0_13], %10 {strides = array<i32>} : memref<24x128xf32, #tpu.memory_space<vmem>>, vector<8x124xf32>,
    %c0_14 = arith.constant 0 : index
    %c0_15 = arith.constant 0 : index
    %c0_16 = arith.constant 0 : index
    %12 = vector.load %arg3[%c0_14, %c0_15, %c0_16] : memref<1x8x128xf32, #tpu.memory_space<vmem>>, vector<1x8x4xf32>
    %13 = vector.shape_cast %12 : vector<1x8x4xf32> to vector<8x4xf32>
    %c16_17 = arith.constant 16 : index
    %c124 = arith.constant 124 : index
    %14 = vector.load %arg7[%c16_17, %c124] : memref<24x128xf32, #tpu.memory_space<vmem>>, vector<8x4xf32>
    tpu.vector_store %arg7[%c16_17, %c124], %13 {strides = array<i32>} : memref<24x128xf32, #tpu.memory_space<vmem>>, vector<8x4xf32>,
    %c0_18 = arith.constant 0 : index
    %c0_19 = arith.constant 0 : index
    %15 = vector.load %arg4[%c0_18, %c0_19] : memref<8x24xf32, #tpu.memory_space<vmem>>, vector<8x24xf32>
    %c0_20 = arith.constant 0 : index
    %c0_21 = arith.constant 0 : index
    %16 = vector.load %arg7[%c0_20, %c0_21] : memref<24x128xf32, #tpu.memory_space<vmem>>, vector<24x128xf32>
    %cst = arith.constant dense<0.000000e+00> : vector<8x128xf32>
    %17 = tpu.matmul %15, %16, %cst {dimension_numbers = #tpu.dot_dimension_numbers<[1], [0], [0], [1], [0, 0, 1, 1], [], []>} : vector<8x24xf32>, vector<24x128xf32>, vector<8x128xf32> -> vector<8x128xf32>
    %c0_22 = arith.constant 0 : index
    %c0_23 = arith.constant 0 : index
    %18 = vector.load %arg5[%c0_22, %c0_23] : memref<8x1xf32, #tpu.memory_space<vmem>>, vector<8x1xf32>
    %19 = vector.broadcast %18 : vector<8x1xf32> to vector<8x128xf32>
    %20 = arith.addf %17, %19 : vector<8x128xf32>
    %cst_24 = arith.constant 0.000000e+00 : f32
    %21 = vector.broadcast %cst_24 : f32 to vector<8x128xf32>
    %22 = arith.maximumf %20, %21 : vector<8x128xf32>
    %c0_25 = arith.constant 0 : index
    %c0_26 = arith.constant 0 : index
    %c0_27 = arith.constant 0 : index
    %23 = vector.load %arg6[%c0_25, %c0_26, %c0_27] : memref<1x8x128xf32, #tpu.memory_space<vmem>>, vector<1x8x128xf32>
    %24 = vector.shape_cast %23 : vector<1x8x128xf32> to vector<8x128xf32>
    %25 = vector.shape_cast %22 : vector<8x128xf32> to vector<1x8x128xf32>
    tpu.vector_store %arg6[%c0_25, %c0_26, %c0_27], %25 {strides = array<i32>} : memref<1x8x128xf32, #tpu.memory_space<vmem>>, vector<1x8x128xf32>,
    return
  }
  func.func @transform_0(%arg0: i32, %arg1: i32) -> (i32, i32, i32) {
    %c0_i32 = arith.constant 0 : i32
    %c0_i32_0 = arith.constant 0 : i32
    return %arg0, %c0_i32, %arg1 : i32, i32, i32
  }
  func.func @transform_1(%arg0: i32, %arg1: i32) -> (i32, i32, i32) {
    %c1_i32 = arith.constant 1 : i32
    %0 = arith.addi %arg1, %c1_i32 : i32
    %c1_i32_0 = arith.constant 1 : i32
    %1 = arith.muli %0, %c1_i32_0 : i32
    %c0_i32 = arith.constant 0 : i32
    %c0_i32_1 = arith.constant 0 : i32
    return %arg0, %c0_i32, %1 : i32, i32, i32
  }
  func.func @transform_2(%arg0: i32, %arg1: i32) -> (i32, i32) {
    %c0_i32 = arith.constant 0 : i32
    %c0_i32_0 = arith.constant 0 : i32
    %c0_i32_1 = arith.constant 0 : i32
    return %c0_i32, %c0_i32_0 : i32, i32
  }
  func.func @transform_3(%arg0: i32, %arg1: i32) -> (i32, i32) {
    %c0_i32 = arith.constant 0 : i32
    %c0_i32_0 = arith.constant 0 : i32
    %c0_i32_1 = arith.constant 0 : i32
    return %c0_i32, %c0_i32_0 : i32, i32
  }
  func.func @transform_4(%arg0: i32, %arg1: i32) -> (i32, i32, i32) {
    %c0_i32 = arith.constant 0 : i32
    %c0_i32_0 = arith.constant 0 : i32
    return %arg0, %c0_i32, %arg1 : i32, i32, i32
  }
}

</mosaic_0001>

<bundles_post_ra>
// kernel: temporal_block.1
= control target key start
LH: loop header
LB: loop body
LE: loop exit
PB: predicated region body
PF: predicated region fallthrough
CT: control target
= control target key end

     0   :  { %9 = vsyncpa [#allocation4], 0  ;;  %s812_s0 = inlined_call_operand.vmem [shape: f32[2,8,256], index: 0, kind: input, shape index: {}, may-alias: {0,1}]   ;;  %s813_s1 = inlined_call_operand.vmem [shape: f32[2,8,256], index: 1, kind: input, shape index: {}, may-alias: {0,1}]   ;;  %s814_s2 = inlined_call_operand.vmem [shape: f32[8,24], index: 2, kind: input, shape index: {}]   ;;  %s815_s3 = inlined_call_operand.vmem [shape: f32[8,1], index: 3, kind: input, shape index: {}]   ;;  %s816_s4 = inlined_call_operand.hbm [shape: f32[2,8,128], index: 4, kind: output, shape index: {}]  }
   0x1   :  { %11 = vsyncpa [#allocation4 + $0x1], 0  ;;  %s691_s15 = smov 0   ;;  %s693_s16 = smov 0  }
   0x2   :  { %s695_s17 = smov 0   ;;  %s697_s18 = smov 0  }
   0x3   :  { %s699_s19 = smov 0   ;;  %s701_s20 = smov 0  }
   0x4 LB: > { %s482_s21 = sadd.s32 4294967295, %s657_s20   ;;  %s483_s22 = sadd.s32 4294967294, %s657_s20   ;;  %s657_s20 = sphi %s701_s20, %s17_s20   ;;  %s653_s19 = sphi %s699_s19, %s823_s19   ;;  %s649_s18 = sphi %s697_s18, %s822_s18   ;;  %s645_s17 = sphi %s695_s17, %s821_s17   ;;  %s641_s16 = sphi %s693_s16, %s820_s16   ;;  %s637_s15 = sphi %s691_s15, %s819_s15  }
   0x5   : > { %s29_s23 = sadd.s32 1, %s653_s19  ;;  %s138_s24 = sadd.s32 1, %s645_s17 }
   0x6   : > { %p31_p0 = scmp.ge.s32.totalorder %s29_s23, 2  ;;  %p148_p1 = scmp.ne.s32.totalorder %s645_s17, %s641_s16 }
   0x7   : > { %p149_p2 = scmp.eq.s32.totalorder %s482_s21, 1  ;;  %p154_p3 = scmp.ne.s32.totalorder %s641_s16, %s637_s15 }
   0x8   : > { %s825_s23 = smov (%p31_p0, %s29_s23), 0  ;;  %p155_p5 = scmp.eq.s32.totalorder %s483_s22, 1 }
   0x9   : > { %p731_p4 = por %p149_p2, %p148_p1  ;;  %s133_s26 = ssub.s32 %s653_s19, %s825_s23 }
   0xa   : > { %p486_p6 = scmp.ge.s32.totalorder %s657_s20, 1  ;;  %p136_p7 = scmp.eq.s32.totalorder %s133_s26, 0 }
   0xb   : > { %p738_p8 = por %p155_p5, %p154_p3  ;;  %p203_p9 = scmp.lt.s32.totalorder %s657_s20, 3 }
   0xc   : > { %s744_s28 = scalar_select %p136_p7, %s645_s17, %s138_s24  }
   0xd   : > { %p204_p10 = pnand %p486_p6, %p203_p9 }
   0xe   : > { %p241_p11 = scmp.lt.s32.totalorder (!%p204_p10), %s649_s18, 1  ;;  %v659_v0 = vmov (!%p204_p10), 0.0|0.0   ;;  %s660_s12 = smov (!%p204_p10), 126   ;;  %vm662_vm0 = vmmov (!%p204_p10), 0   ;;  %v663_v3 = vmov (!%p204_p10), 0.0   ;;  %v293_v4 = vld [vmem:[%s815_s3] sm:$0xff] (!%p204_p10) }
   0xf   : > { %207 = sbr.rel (%p204_p10) target bundleno = 391 (0x187), region = 36  ;;  %514 = vmatprep.subr.bf16.mxu0 (!%p204_p10), %v659_v0  ;;  %s661_s13 = smov (!%p204_p10), 124   ;;  %511 = vmatprep.mubr.msk.f32.mxu0 (!%p204_p10), %vm662_vm0, %v663_v3  ;;  %v664_v5 = vmov (!%p204_p10), 0   ;;  %vm266_vm1 = vcmask (!%p204_p10), 1031168   ;;  %vm280_vm2 = vcmask (!%p204_p10), 1014784   ;;  %vm273_vm3 = vcmask (!%p204_p10), 1048560  }
  0x10   : > { %578 = vset.pattern.permute.xlu0 (!%p204_p10), %v664_v5  ;;  %vm287_vm4 = vcmask (!%p204_p10), 1048544   ;;  %v289_v13 = vld [vmem:[%s814_s2] sm:$0xff] (!%p204_p10)  ;;  %vm299_vm5 = vcmask (!%p204_p10), 195584   ;;  %s238_s26 = sand.u32 (!%p204_p10), 1, %s641_s16  }
  0x11   : > { %s376_s10 = scalar_lea.sflag (!%p204_p10), [#allocation4], %s238_s26 }
  0x16   : > { %s242_s29 = scalar_select %p241_p11, %s649_s18, 1 }
  0x18   : > { %s497_s30 = sshll.u32 %s242_s29, 4  ;;  %s487_s29 = sshll.u32 %s238_s26, 3 }
  0x19   : > { %s248_s7 = scalar_lea.vmem %s812_s0, %s497_s30  ;;  %s499_s8 = sadd.s32 8, %s497_s30 }
  0x1a   : > { %v261_v1 = vld [vmem:[%s248_s7] sm:$0xff]  ;;  %s257_s11 = scalar_lea.vmem %s813_s1, %s499_s8  ;;  %s494_s30 = sshll.u32 %s649_s18, 7 }
  0x1b   : > { %263 = vrot.lane.b32.xlu0 %v261_v1, %s660_s12  ;;  %277 = vrot.lane.b32.xlu1 %v261_v1, %s661_s13  ;;  %v268_v2 = vld [vmem:[%s257_s11] sm:$0xff]  ;;  %s240_s5 = scalar_lea.vmem [#allocation3], %s487_s29  ;;  %s765_s9 = scalar_lea.hbm %s816_s4, %s494_s30 }
  0x1c   : > { %s390_s6 = sshll.u32 %s240_s5, 4  ;;  %s665_s18 = smov [#allocation3]   ;;  %s767_s6 = int_to_ptr.vmem [resolvable:$true] %s390_s6 }
  0x1d   : > { %s579_s11 = scalar_lea.vmem %s767_s6, 128 }
  0x1e   : > { %p580_p12 = scmp.ne.s32.totalorder %s767_s6, %s579_s11 }
  0x1f   : > { %270 = vrot.lane.b32.xlu0 %v268_v2, %s660_s12  ;;  %284 = vrot.lane.b32.xlu1 %v268_v2, %s661_s13  ;;  %s583_s12 = sshll.u32 %s665_s18, 4  ;;  %s584_s12 = int_to_ptr.vmem [resolvable:$false] %s583_s12 }
  0x20   : > { %p581_p13 = pnand %p580_p12, %p731_p4  ;;  %s585_s13 = scalar_lea.vmem %s584_s12, 256 }
  0x21   : > { %p586_p1 = scmp.lt.s32.totalorder %s767_s6, %s584_s12  ;;  %p587_p2 = scmp.lt.s32.totalorder %s585_s13, %s579_s11 }
  0x22   : > { %p582_p0 = pneg %p581_p13 }
  0x23   : > { %296 = vperm.xlu0 %578, %v293_v4   ;;  %p588_p3 = por %p587_p2, %p586_p1 }
  0x25   : > { %p589_p5 = pnand %p588_p3, %p582_p0 }
  0x8d   : > { %v264_v6 = vpop.permute.xlu0 %263  ;;  %v278_v7 = vpop.permute.xlu1 %277 }
  0x8e   : > { %267 = vst.msk [vmem:[#allocation2 + $0x8] sm:$0xff] %vm266_vm1, %v264_v6 }
  0x8f   : > { %281 = vst.msk [vmem:[#allocation2 + $0x10] sm:$0xff] %vm280_vm2, %v278_v7 }
  0x91   : > { %v271_v8 = vpop.permute.xlu0 %270  ;;  %v285_v9 = vpop.permute.xlu1 %284 }
  0x92   : > { %274 = vst.msk [vmem:[#allocation2 + $0x8] sm:$0xff] %vm273_vm3, %v271_v8 }
  0x93   : > { %288 = vst.msk [vmem:[#allocation2 + $0x10] sm:$0xff] %vm287_vm4, %v285_v9 }
  0x99   : > { %v291_v10 = vld [vmem:[#allocation2 + $0x8] sm:$0xff] }
  0x9a   : > { %v515_v11 = vpack.c.bf16 %v291_v10, %v261_v1  ;;  %v292_v12 = vld [vmem:[#allocation2 + $0x10] sm:$0xff] }
  0x9c   : > { %516 = vmatpush3.bf16.msra.mxu0 %v515_v11 }
  0x9d   : > { %509 = vmatprep.subr.mxu0 %v663_v3 }
  0xa0   : > { %510 = vmatpush3.msra.mxu0 %v292_v12 }
  0xa1   : > { %512 = vmatmul.mubr.msk.f32.vlgmr.msra.gmra.mrb[0].mxu0 %vm299_vm5, %v289_v13 }
  0xa2   : > { %v297_v14 = vpop.permute.xlu0 %296 }
 0x174   : > { %v369_v15 = vpop.f32.mrb[0].mxu0 }
 0x175   : > { %v370_v16 = vadd.f32 %v369_v15, %v297_v14  ;;  %v513_v17 = vpop.f32.mrb[1].mxu0 }
 0x177   : > { %v373_v18 = vmax.f32 %v370_v16, 0.0 }
 0x179   : > { %374 = vst [vmem:[%s240_s5] sm:$0xff] %v373_v18 }
 0x17a   : > { %592 = shalt.err (!%p589_p5)
}
 0x17b   : > { %s593_s14 = scalar_lea.hbm %s765_s9, 128  ;;  %s597_s24 = scalar_lea.hbm %s816_s4, 256 }
 0x17c   : > { %p594_p6 = scmp.ne.s32.totalorder %s765_s9, %s593_s14  ;;  %p598_p10 = scmp.lt.u32.totalorder %s765_s9, %s816_s4 }
 0x17d   : > { %p599_p11 = scmp.lt.u32.totalorder %s597_s24, %s593_s14  ;;  %p601_p13 = scmp.lt.u32.totalorder %s593_s14, %s765_s9 }
 0x17e   : > { %p595_p7 = pnand %p594_p6, %p731_p4 }
 0x17f   : > { %p600_p12 = por %p599_p11, %p598_p10 }
 0x180   : > { %p596_p9 = pneg %p595_p7 }
 0x181   : > { %p602_p0 = por %p601_p13, %p600_p12 }
 0x183   : > { %p603_p1 = pnand %p602_p0, %p596_p9 }
 0x185   : > { %606 = shalt.err (!%p603_p1)
}
 0x186   : > { %517 = dma.vmem_to_hbm [thread:$0]  (%p731_p4), %s767_s6, 128, %s765_s9, %s376_s10  }
 0x187 PF: > { %p523_p2 = scmp.ge.s32.totalorder %s657_s20, 2  ;;  %s402_s30 = sand.u32 1, %s637_s15  }
 0x188   : > { %s403_s5 = scalar_lea.sflag [#allocation4], %s402_s30 }
 0x189   : > { %p520_p3 = pnand %p523_p2, %p738_p8 }
 0x18b   : > { %632 = dma.done.wait (!%p520_p3), %s403_s5, 128  }
 0x18c   : > { %634 = vsyncadd (!%p520_p3), %s403_s5, 4294967168  ;;  %s17_s20 = sadd.s32 1, %s657_s20   ;;  %s819_s15 = smov %s641_s16 }
 0x18d   : > { %p14_p5 = scmp.ge.s32.totalorder %s17_s20, 4   ;;  %s820_s16 = smov %s645_s17 }
 0x18e   : > { %s821_s17 = smov %s744_s28  ;;  %s822_s18 = smov %s653_s19 }
 0x18f   : > { %s823_s19 = smov %s825_s23  ;;  %16 = sbr.rel (!%p14_p5) target bundleno = 4 (0x4), region = 74 }
 0x196   :  { %408 = vsyncpa [#allocation4], 1 }
 0x197   :  { %410 = vsyncpa [#allocation4 + $0x1], 1 }

</bundles_post_ra>
